<compile_context>
chip_gen: v6e
topology: v6e:2x2x1
jax: 0.10.0
libtpu: 0.0.40
codegen_flags: <defaults>
</compile_context>

<pallas_src>
import functools

import jax
import jax.numpy as jnp
from jax import lax
from jax.experimental import pallas as pl
from jax.experimental.pallas import tpu as pltpu


# ----------------------------- in-kernel helpers -----------------------------

def _layernorm(h, g, b, eps=1e-5):
    # One-pass statistics: E[x], E[x^2]; var = E[x^2] - mu^2.
    mu = jnp.mean(h, axis=-1, keepdims=True)
    ms = jnp.mean(h * h, axis=-1, keepdims=True)
    var = ms - mu * mu
    inv = lax.rsqrt(var + eps)
    return (h - mu) * (inv * g) + b


def _erf(x):
    # Abramowitz & Stegun 7.1.26 rational approximation (|err| < 1.5e-7).
    a1, a2, a3, a4, a5 = 0.254829592, -0.284496736, 1.421413741, -1.453152027, 1.061405429
    p = 0.3275911
    s = jnp.where(x >= 0.0, 1.0, -1.0)
    ax = jnp.abs(x)
    t = pl.reciprocal(1.0 + p * ax, approx=True)          # EUP, frees the VPU
    poly = ((((a5 * t + a4) * t + a3) * t + a2) * t + a1) * t
    return s * (1.0 - poly * jnp.exp(-ax * ax))


def _gelu_exact(x):
    # nn.GELU default = exact (erf-based) GELU.
    return 0.5 * x * (1.0 + _erf(x * (2.0 ** -0.5)))


# --------------------------------- kernel ------------------------------------

def block_kernel(x_ref,
                 ln1_g_ref, ln1_b_ref, ln2_g_ref, ln2_b_ref,
                 w_qkv_ref, w_proj_ref, b_proj_ref,
                 w_fc1_ref, b_fc1_ref, w_fc2_ref, b_fc2_ref,
                 o_ref, *, num_heads, n_valid):
    f32 = jnp.float32
    mxu = w_qkv_ref.dtype                     # matmul operand dtype (bf16)

    x = x_ref[0].astype(f32)                  # (Np, C) tile for this batch elem
    Np, C = x.shape
    hd = C // num_heads
    scale = float(hd) ** -0.5

    # ---- Attention branch: attn(norm1(x)) ----
    h = _layernorm(x, ln1_g_ref[0], ln1_b_ref[0])
    qkv = jnp.dot(h.astype(mxu), w_qkv_ref[...],
                  preferred_element_type=f32)               # (Np, 3C) f32
    q = qkv[:, 0:C] * scale                   # fold softmax scale into q
    k = qkv[:, C:2 * C]
    v = qkv[:, 2 * C:3 * C]

    # Key-side mask for sublane padding rows (compile-time constant branch).
    if n_valid < Np:
        col = lax.broadcasted_iota(jnp.int32, (Np, Np), 1)
        score_bias = jnp.where(col < n_valid, 0.0, -1e30).astype(f32)
    else:
        score_bias = None

    # Per-head attention with the output projection accumulated in the loop.
    acc = jnp.zeros((Np, C), f32)
    for hi in range(num_heads):               # static unroll (num_heads small)
        s, e = hi * hd, (hi + 1) * hd
        qh = q[:, s:e].astype(mxu)
        kh = k[:, s:e].astype(mxu)
        vh = v[:, s:e].astype(mxu)
        # q @ k^T without an explicit transpose: contract hd on both operands.
        sc = lax.dot_general(qh, kh, (((1,), (1,)), ((), ())),
                             preferred_element_type=f32)    # (Np, Np)
        if score_bias is not None:
            sc = sc + score_bias
        sc = sc - jnp.max(sc, axis=-1, keepdims=True)
        ex = jnp.exp(sc)
        p = ex * pl.reciprocal(jnp.sum(ex, axis=-1, keepdims=True), approx=True)
        oh = jnp.dot(p.astype(mxu), vh, preferred_element_type=f32)   # (Np, hd)
        acc = acc + jnp.dot(oh.astype(mxu), w_proj_ref[s:e, :],
                            preferred_element_type=f32)               # (Np, C)

    x = x + acc + b_proj_ref[0]               # residual 1 (ls1/drop_path1 = Id)

    # ---- MLP branch: mlp(norm2(x)) ----
    h2 = _layernorm(x, ln2_g_ref[0], ln2_b_ref[0])
    z = jnp.dot(h2.astype(mxu), w_fc1_ref[...],
                preferred_element_type=f32) + b_fc1_ref[0]
    z = _gelu_exact(z)
    z = jnp.dot(z.astype(mxu), w_fc2_ref[...],
                preferred_element_type=f32) + b_fc2_ref[0]

    o_ref[0] = (x + z).astype(o_ref.dtype)    # residual 2, explicit store cast


# -------------------------------- wrapper ------------------------------------

def vit_block(x, params, num_heads, *, mxu_dtype=jnp.bfloat16):
    B, N, C = x.shape
    H = params["w_fc1"].shape[1]
    assert C % num_heads == 0

    # N maps to the sublane axis -> pad to a multiple of 8 and mask pad keys
    # inside the kernel; pad rows are sliced off afterwards.
    Np = ((N + 7) // 8) * 8
    xp = x if Np == N else jnp.pad(x, ((0, 0), (0, Np - N), (0, 0)))

    # Cast matmul weights once (wrapper side): MXU bf16 fast path + half the
    # weight HBM/VMEM footprint (bf16 ViT-B weights double-buffer within v7x
    # 64 MiB VMEM, so default buffering is fine).
    wd = lambda w: w.astype(mxu_dtype)
    w_qkv, w_proj = wd(params["w_qkv"]), wd(params["w_proj"])
    w_fc1, w_fc2 = wd(params["w_fc1"]), wd(params["w_fc2"])

    def const_spec(shape):
        nd = len(shape)
        return pl.BlockSpec(shape, lambda b, _nd=nd: (0,) * _nd)

    in_specs = [
        pl.BlockSpec((1, Np, C), lambda b: (b, 0, 0)),       # x
        const_spec((1, C)), const_spec((1, C)),              # ln1 gamma, beta
        const_spec((1, C)), const_spec((1, C)),              # ln2 gamma, beta
        const_spec((C, 3 * C)),                              # qkv weight (in,out)
        const_spec((C, C)), const_spec((1, C)),              # proj weight, bias
        const_spec((C, H)), const_spec((1, H)),              # fc1 weight, bias
        const_spec((H, C)), const_spec((1, C)),              # fc2 weight, bias
    ]
    out_spec = pl.BlockSpec((1, Np, C), lambda b: (b, 0, 0))

    # Advisory cost estimate so XLA schedules surrounding ops sensibly.
    itemsize = int(jnp.dtype(x.dtype).itemsize)
    w_item = int(jnp.dtype(mxu_dtype).itemsize)
    flops = 2 * B * N * C * (3 * C + C + 2 * H) + 4 * B * N * N * C
    transc = B * (num_heads * N * N + N * H + 4 * N)
    bytes_acc = (2 * B * Np * C * itemsize
                 + (3 * C * C + C * C + 2 * C * H) * w_item
                 + (6 * C + H) * 4)

    kernel = functools.partial(block_kernel, num_heads=num_heads, n_valid=N)
    out = pl.pallas_call(
        kernel,
        out_shape=jax.ShapeDtypeStruct((B, Np, C), x.dtype),
        grid_spec=pltpu.PrefetchScalarGridSpec(
            num_scalar_prefetch=0,
            grid=(B,),
            in_specs=in_specs,
            out_specs=out_spec,
        ),
        compiler_params=pltpu.CompilerParams(
            dimension_semantics=("parallel",),          # megacore-shardable on v7x
            vmem_limit_bytes=64 * 1024 * 1024,          # above 16/32 MiB defaults
        ),
        cost_estimate=pl.CostEstimate(flops=flops, transcendentals=transc,
                                      bytes_accessed=bytes_acc),
    )(xp,
      params["ln1_g"], params["ln1_b"], params["ln2_g"], params["ln2_b"],
      w_qkv, w_proj, params["b_proj"],
      w_fc1, params["b_fc1"], w_fc2, params["b_fc2"])
    return out if Np == N else out[:, :N, :]


# --------------------------- pure-JAX reference -------------------------------

def vit_block_ref(x, params, num_heads, matmul_dtype=None):
    """PyTorch-equivalent forward.  If matmul_dtype is set, matmul operands are
    cast (mirroring the kernel's bf16 MXU inputs) with f32 accumulation."""
    B, N, C = x.shape
    hd = C // num_heads
    scale = float(hd) ** -0.5
    cast = (lambda a: a.astype(matmul_dtype)) if matmul_dtype is not None else (lambda a: a)

    def ln(h, g, b):
        mu = jnp.mean(h, axis=-1, keepdims=True)
        var = jnp.mean((h - mu) ** 2, axis=-1, keepdims=True)
        return (h - mu) * lax.rsqrt(var + 1e-5) * g[0] + b[0]

    h = ln(x, params["ln1_g"], params["ln1_b"])
    qkv = jnp.einsum("bnc,cd->bnd", cast(h), cast(params["w_qkv"]),
                     preferred_element_type=jnp.float32)
    qkv = qkv.reshape(B, N, 3, num_heads, hd).transpose(2, 0, 3, 1, 4)
    q, k, v = qkv[0], qkv[1], qkv[2]                              # (B, nh, N, hd)
    attn = jnp.einsum("bhnd,bhmd->bhnm", cast(q * scale), cast(k),
                      preferred_element_type=jnp.float32)
    attn = jax.nn.softmax(attn, axis=-1)
    o = jnp.einsum("bhnm,bhmd->bhnd", cast(attn), cast(v),
                   preferred_element_type=jnp.float32)
    o = o.transpose(0, 2, 1, 3).reshape(B, N, C)
    o = jnp.einsum("bnc,cd->bnd", cast(o), cast(params["w_proj"]),
                   preferred_element_type=jnp.float32) + params["b_proj"][0]
    x = x + o

    h2 = ln(x, params["ln2_g"], params["ln2_b"])
    z = jnp.einsum("bnc,ch->bnh", cast(h2), cast(params["w_fc1"]),
                   preferred_element_type=jnp.float32) + params["b_fc1"][0]
    z = jax.nn.gelu(z, approximate=False)
    z = jnp.einsum("bnh,hc->bnc", cast(z), cast(params["w_fc2"]),
                   preferred_element_type=jnp.float32) + params["b_fc2"][0]
    return x + z


# ---------------------------------- main --------------------------------------

if __name__ == "__main__":
    B, N, C = 2, 8, 32
    num_heads = 4
    mlp_ratio = 4.0
    H = int(C * mlp_ratio)

    key = jax.random.PRNGKey(0)
    kx, kqkv, kproj, kbp, kf1, kb1, kf2, kb2 = jax.random.split(key, 8)

    def uinit(k, shape, fan_in):
        bound = 1.0 / (fan_in ** 0.5)
        return jax.random.uniform(k, shape, jnp.float32, -bound, bound)

    params = {
        # LayerNorm params use PyTorch default init (gamma=1, beta=0)
        "ln1_g": jnp.ones((1, C), jnp.float32),
        "ln1_b": jnp.zeros((1, C), jnp.float32),
        "ln2_g": jnp.ones((1, C), jnp.float32),
        "ln2_b": jnp.zeros((1, C), jnp.float32),
        # qkv_bias=False (Block default) -> no qkv bias
        "w_qkv": uinit(kqkv, (C, 3 * C), C),
        "w_proj": uinit(kproj, (C, C), C),
        "b_proj": uinit(kbp, (1, C), C),
        "w_fc1": uinit(kf1, (C, H), C),
        "b_fc1": uinit(kb1, (1, H), C),
        "w_fc2": uinit(kf2, (H, C), H),
        "b_fc2": uinit(kb2, (1, C), H),
    }

    x = jax.random.normal(kx, (B, N, C), jnp.float32)

    out = jax.block_until_ready(vit_block(x, params, num_heads))
    assert out.shape == (B, N, C)

    # Reference with the same bf16 matmul-operand rounding as the kernel.
    ref_bf16 = vit_block_ref(x, params, num_heads, matmul_dtype=jnp.bfloat16)
    err = float(jnp.max(jnp.abs(out - ref_bf16)))
    assert jnp.allclose(out, ref_bf16, rtol=1e-2, atol=1e-2), err

    # Sanity check vs the exact f32 (PyTorch-equivalent) forward.
    ref_f32 = vit_block_ref(x, params, num_heads, matmul_dtype=None)
    err32 = float(jnp.max(jnp.abs(out - ref_f32)))
    assert jnp.allclose(out, ref_f32, rtol=1e-1, atol=1e-1), err32

    print("KERNEL_OK")
</pallas_src>

<mosaic_0001>
module attributes {stable_mosaic.version = 11 : i64} {
  func.func @block_kernel(%arg0: i32, %arg1: memref<1x8x32xf32, #tpu.memory_space<vmem>>, %arg2: memref<1x32xf32, #tpu.memory_space<vmem>>, %arg3: memref<1x32xf32, #tpu.memory_space<vmem>>, %arg4: memref<1x32xf32, #tpu.memory_space<vmem>>, %arg5: memref<1x32xf32, #tpu.memory_space<vmem>>, %arg6: memref<32x96xbf16, #tpu.memory_space<vmem>>, %arg7: memref<32x32xbf16, #tpu.memory_space<vmem>>, %arg8: memref<1x32xf32, #tpu.memory_space<vmem>>, %arg9: memref<32x128xbf16, #tpu.memory_space<vmem>>, %arg10: memref<1x128xf32, #tpu.memory_space<vmem>>, %arg11: memref<128x32xbf16, #tpu.memory_space<vmem>>, %arg12: memref<1x32xf32, #tpu.memory_space<vmem>>, %arg13: memref<1x8x32xf32, #tpu.memory_space<vmem>>) attributes {dimension_semantics = [#tpu.dimension_semantics<parallel>], iteration_bounds = array<i64: 2>, scalar_prefetch = 0 : i64, scratch_operands = 0 : i64, tpu.core_type = #tpu.core_type<tc>, window_params = [{transform_indices = @transform_0, window_bounds = array<i64: 1, 8, 32>}, {pipeline_mode = #tpu.pipeline_mode<synchronous>, transform_indices = @transform_1, window_bounds = array<i64: 1, 32>}, {pipeline_mode = #tpu.pipeline_mode<synchronous>, transform_indices = @transform_2, window_bounds = array<i64: 1, 32>}, {pipeline_mode = #tpu.pipeline_mode<synchronous>, transform_indices = @transform_3, window_bounds = array<i64: 1, 32>}, {pipeline_mode = #tpu.pipeline_mode<synchronous>, transform_indices = @transform_4, window_bounds = array<i64: 1, 32>}, {pipeline_mode = #tpu.pipeline_mode<synchronous>, transform_indices = @transform_5, window_bounds = array<i64: 32, 96>}, {pipeline_mode = #tpu.pipeline_mode<synchronous>, transform_indices = @transform_6, window_bounds = array<i64: 32, 32>}, {pipeline_mode = #tpu.pipeline_mode<synchronous>, transform_indices = @transform_7, window_bounds = array<i64: 1, 32>}, {pipeline_mode = #tpu.pipeline_mode<synchronous>, transform_indices = @transform_8, window_bounds = array<i64: 32, 128>}, {pipeline_mode = #tpu.pipeline_mode<synchronous>, transform_indices = @transform_9, window_bounds = array<i64: 1, 128>}, {pipeline_mode = #tpu.pipeline_mode<synchronous>, transform_indices = @transform_10, window_bounds = array<i64: 128, 32>}, {pipeline_mode = #tpu.pipeline_mode<synchronous>, transform_indices = @transform_11, window_bounds = array<i64: 1, 32>}, {transform_indices = @transform_12, window_bounds = array<i64: 1, 8, 32>}]} {
    %c0 = arith.constant 0 : index
    %c0_0 = arith.constant 0 : index
    %c0_1 = arith.constant 0 : index
    %0 = vector.load %arg1[%c0, %c0_0, %c0_1] : memref<1x8x32xf32, #tpu.memory_space<vmem>>, vector<1x8x32xf32>
    %1 = vector.shape_cast %0 : vector<1x8x32xf32> to vector<8x32xf32>
    %c0_2 = arith.constant 0 : index
    %c0_3 = arith.constant 0 : index
    %2 = vector.load %arg2[%c0_2, %c0_3] : memref<1x32xf32, #tpu.memory_space<vmem>>, vector<1x32xf32>
    %3 = vector.shape_cast %2 : vector<1x32xf32> to vector<32xf32>
    %c0_4 = arith.constant 0 : index
    %c0_5 = arith.constant 0 : index
    %4 = vector.load %arg3[%c0_4, %c0_5] : memref<1x32xf32, #tpu.memory_space<vmem>>, vector<1x32xf32>
    %5 = vector.shape_cast %4 : vector<1x32xf32> to vector<32xf32>
    %cst = arith.constant dense<0.000000e+00> : vector<8xf32>
    %6 = vector.multi_reduction <add>, %1, %cst [1] : vector<8x32xf32> to vector<8xf32>
    %7 = vector.shape_cast %6 : vector<8xf32> to vector<8x1xf32>
    %cst_6 = arith.constant 3.200000e+01 : f32
    %8 = vector.broadcast %cst_6 : f32 to vector<8x1xf32>
    %9 = arith.divf %7, %8 : vector<8x1xf32>
    %10 = arith.mulf %1, %1 : vector<8x32xf32>
    %cst_7 = arith.constant dense<0.000000e+00> : vector<8xf32>
    %11 = vector.multi_reduction <add>, %10, %cst_7 [1] : vector<8x32xf32> to vector<8xf32>
    %12 = vector.shape_cast %11 : vector<8xf32> to vector<8x1xf32>
    %cst_8 = arith.constant 3.200000e+01 : f32
    %13 = vector.broadcast %cst_8 : f32 to vector<8x1xf32>
    %14 = arith.divf %12, %13 : vector<8x1xf32>
    %15 = arith.mulf %9, %9 : vector<8x1xf32>
    %16 = arith.subf %14, %15 : vector<8x1xf32>
    %cst_9 = arith.constant 9.99999974E-6 : f32
    %17 = vector.broadcast %cst_9 : f32 to vector<8x1xf32>
    %18 = arith.addf %16, %17 : vector<8x1xf32>
    %19 = math.rsqrt %18 : vector<8x1xf32>
    %20 = vector.broadcast %9 : vector<8x1xf32> to vector<8x32xf32>
    %21 = arith.subf %1, %20 : vector<8x32xf32>
    %22 = vector.shape_cast %3 : vector<32xf32> to vector<1x32xf32>
    %23 = vector.broadcast %19 : vector<8x1xf32> to vector<8x32xf32>
    %24 = vector.broadcast %22 : vector<1x32xf32> to vector<8x32xf32>
    %25 = arith.mulf %23, %24 : vector<8x32xf32>
    %26 = arith.mulf %21, %25 : vector<8x32xf32>
    %27 = vector.shape_cast %5 : vector<32xf32> to vector<1x32xf32>
    %28 = vector.broadcast %27 : vector<1x32xf32> to vector<8x32xf32>
    %29 = arith.addf %26, %28 : vector<8x32xf32>
    %30 = arith.truncf %29 : vector<8x32xf32> to vector<8x32xbf16>
    %c0_10 = arith.constant 0 : index
    %c0_11 = arith.constant 0 : index
    %31 = vector.load %arg6[%c0_10, %c0_11] : memref<32x96xbf16, #tpu.memory_space<vmem>>, vector<32x96xbf16>
    %cst_12 = arith.constant dense<0.000000e+00> : vector<8x96xf32>
    %32 = tpu.matmul %30, %31, %cst_12 {dimension_numbers = #tpu.dot_dimension_numbers<[1], [0], [0], [1], [0, 0, 1, 1], [], []>} : vector<8x32xbf16>, vector<32x96xbf16>, vector<8x96xf32> -> vector<8x96xf32>
    %33 = vector.extract_strided_slice %32 {offsets = [0, 0], sizes = [8, 32], strides = [1, 1]} : vector<8x96xf32> to vector<8x32xf32>
    %cst_13 = arith.constant 0.353553385 : f32
    %34 = vector.broadcast %cst_13 : f32 to vector<8x32xf32>
    %35 = arith.mulf %33, %34 : vector<8x32xf32>
    %36 = vector.extract_strided_slice %32 {offsets = [0, 32], sizes = [8, 32], strides = [1, 1]} : vector<8x96xf32> to vector<8x32xf32>
    %37 = vector.extract_strided_slice %32 {offsets = [0, 64], sizes = [8, 32], strides = [1, 1]} : vector<8x96xf32> to vector<8x32xf32>
    %cst_14 = arith.constant 0.000000e+00 : f32
    %38 = vector.broadcast %cst_14 : f32 to vector<8x32xf32>
    %39 = vector.extract_strided_slice %35 {offsets = [0, 0], sizes = [8, 8], strides = [1, 1]} : vector<8x32xf32> to vector<8x8xf32>
    %40 = arith.truncf %39 : vector<8x8xf32> to vector<8x8xbf16>
    %41 = vector.extract_strided_slice %36 {offsets = [0, 0], sizes = [8, 8], strides = [1, 1]} : vector<8x32xf32> to vector<8x8xf32>
    %42 = arith.truncf %41 : vector<8x8xf32> to vector<8x8xbf16>
    %43 = vector.extract_strided_slice %37 {offsets = [0, 0], sizes = [8, 8], strides = [1, 1]} : vector<8x32xf32> to vector<8x8xf32>
    %44 = arith.truncf %43 : vector<8x8xf32> to vector<8x8xbf16>
    %cst_15 = arith.constant dense<0.000000e+00> : vector<8x8xf32>
    %45 = tpu.matmul %40, %42, %cst_15 {dimension_numbers = #tpu.dot_dimension_numbers<[1], [1], [0], [0], [0, 0, 1, 0], [], []>} : vector<8x8xbf16>, vector<8x8xbf16>, vector<8x8xf32> -> vector<8x8xf32>
    %cst_16 = arith.constant dense<0xFF800000> : vector<8xf32>
    %46 = vector.multi_reduction <maximumf>, %45, %cst_16 [1] : vector<8x8xf32> to vector<8xf32>
    %47 = vector.shape_cast %46 : vector<8xf32> to vector<8x1xf32>
    %48 = vector.broadcast %47 : vector<8x1xf32> to vector<8x8xf32>
    %49 = arith.subf %45, %48 : vector<8x8xf32>
    %50 = math.exp %49 : vector<8x8xf32>
    %cst_17 = arith.constant dense<0.000000e+00> : vector<8xf32>
    %51 = vector.multi_reduction <add>, %50, %cst_17 [1] : vector<8x8xf32> to vector<8xf32>
    %52 = vector.shape_cast %51 : vector<8xf32> to vector<8x1xf32>
    %53 = tpu.reciprocal %52 {approx = true} : vector<8x1xf32> -> vector<8x1xf32>
    %54 = vector.broadcast %53 : vector<8x1xf32> to vector<8x8xf32>
    %55 = arith.mulf %50, %54 : vector<8x8xf32>
    %56 = arith.truncf %55 : vector<8x8xf32> to vector<8x8xbf16>
    %cst_18 = arith.constant dense<0.000000e+00> : vector<8x8xf32>
    %57 = tpu.matmul %56, %44, %cst_18 {dimension_numbers = #tpu.dot_dimension_numbers<[1], [0], [0], [1], [0, 0, 1, 1], [], []>} : vector<8x8xbf16>, vector<8x8xbf16>, vector<8x8xf32> -> vector<8x8xf32>
    %58 = arith.truncf %57 : vector<8x8xf32> to vector<8x8xbf16>
    %c0_19 = arith.constant 0 : index
    %c0_20 = arith.constant 0 : index
    %59 = vector.load %arg7[%c0_19, %c0_20] : memref<32x32xbf16, #tpu.memory_space<vmem>>, vector<8x32xbf16>
    %cst_21 = arith.constant dense<0.000000e+00> : vector<8x32xf32>
    %60 = tpu.matmul %58, %59, %cst_21 {dimension_numbers = #tpu.dot_dimension_numbers<[1], [0], [0], [1], [0, 0, 1, 1], [], []>} : vector<8x8xbf16>, vector<8x32xbf16>, vector<8x32xf32> -> vector<8x32xf32>
    %61 = arith.addf %38, %60 : vector<8x32xf32>
    %62 = vector.extract_strided_slice %35 {offsets = [0, 8], sizes = [8, 8], strides = [1, 1]} : vector<8x32xf32> to vector<8x8xf32>
    %63 = arith.truncf %62 : vector<8x8xf32> to vector<8x8xbf16>
    %64 = vector.extract_strided_slice %36 {offsets = [0, 8], sizes = [8, 8], strides = [1, 1]} : vector<8x32xf32> to vector<8x8xf32>
    %65 = arith.truncf %64 : vector<8x8xf32> to vector<8x8xbf16>
    %66 = vector.extract_strided_slice %37 {offsets = [0, 8], sizes = [8, 8], strides = [1, 1]} : vector<8x32xf32> to vector<8x8xf32>
    %67 = arith.truncf %66 : vector<8x8xf32> to vector<8x8xbf16>
    %cst_22 = arith.constant dense<0.000000e+00> : vector<8x8xf32>
    %68 = tpu.matmul %63, %65, %cst_22 {dimension_numbers = #tpu.dot_dimension_numbers<[1], [1], [0], [0], [0, 0, 1, 0], [], []>} : vector<8x8xbf16>, vector<8x8xbf16>, vector<8x8xf32> -> vector<8x8xf32>
    %cst_23 = arith.constant dense<0xFF800000> : vector<8xf32>
    %69 = vector.multi_reduction <maximumf>, %68, %cst_23 [1] : vector<8x8xf32> to vector<8xf32>
    %70 = vector.shape_cast %69 : vector<8xf32> to vector<8x1xf32>
    %71 = vector.broadcast %70 : vector<8x1xf32> to vector<8x8xf32>
    %72 = arith.subf %68, %71 : vector<8x8xf32>
    %73 = math.exp %72 : vector<8x8xf32>
    %cst_24 = arith.constant dense<0.000000e+00> : vector<8xf32>
    %74 = vector.multi_reduction <add>, %73, %cst_24 [1] : vector<8x8xf32> to vector<8xf32>
    %75 = vector.shape_cast %74 : vector<8xf32> to vector<8x1xf32>
    %76 = tpu.reciprocal %75 {approx = true} : vector<8x1xf32> -> vector<8x1xf32>
    %77 = vector.broadcast %76 : vector<8x1xf32> to vector<8x8xf32>
    %78 = arith.mulf %73, %77 : vector<8x8xf32>
    %79 = arith.truncf %78 : vector<8x8xf32> to vector<8x8xbf16>
    %cst_25 = arith.constant dense<0.000000e+00> : vector<8x8xf32>
    %80 = tpu.matmul %79, %67, %cst_25 {dimension_numbers = #tpu.dot_dimension_numbers<[1], [0], [0], [1], [0, 0, 1, 1], [], []>} : vector<8x8xbf16>, vector<8x8xbf16>, vector<8x8xf32> -> vector<8x8xf32>
    %81 = arith.truncf %80 : vector<8x8xf32> to vector<8x8xbf16>
    %c8 = arith.constant 8 : index
    %c0_26 = arith.constant 0 : index
    %82 = vector.load %arg7[%c8, %c0_26] : memref<32x32xbf16, #tpu.memory_space<vmem>>, vector<8x32xbf16>
    %cst_27 = arith.constant dense<0.000000e+00> : vector<8x32xf32>
    %83 = tpu.matmul %81, %82, %cst_27 {dimension_numbers = #tpu.dot_dimension_numbers<[1], [0], [0], [1], [0, 0, 1, 1], [], []>} : vector<8x8xbf16>, vector<8x32xbf16>, vector<8x32xf32> -> vector<8x32xf32>
    %84 = arith.addf %61, %83 : vector<8x32xf32>
    %85 = vector.extract_strided_slice %35 {offsets = [0, 16], sizes = [8, 8], strides = [1, 1]} : vector<8x32xf32> to vector<8x8xf32>
    %86 = arith.truncf %85 : vector<8x8xf32> to vector<8x8xbf16>
    %87 = vector.extract_strided_slice %36 {offsets = [0, 16], sizes = [8, 8], strides = [1, 1]} : vector<8x32xf32> to vector<8x8xf32>
    %88 = arith.truncf %87 : vector<8x8xf32> to vector<8x8xbf16>
    %89 = vector.extract_strided_slice %37 {offsets = [0, 16], sizes = [8, 8], strides = [1, 1]} : vector<8x32xf32> to vector<8x8xf32>
    %90 = arith.truncf %89 : vector<8x8xf32> to vector<8x8xbf16>
    %cst_28 = arith.constant dense<0.000000e+00> : vector<8x8xf32>
    %91 = tpu.matmul %86, %88, %cst_28 {dimension_numbers = #tpu.dot_dimension_numbers<[1], [1], [0], [0], [0, 0, 1, 0], [], []>} : vector<8x8xbf16>, vector<8x8xbf16>, vector<8x8xf32> -> vector<8x8xf32>
    %cst_29 = arith.constant dense<0xFF800000> : vector<8xf32>
    %92 = vector.multi_reduction <maximumf>, %91, %cst_29 [1] : vector<8x8xf32> to vector<8xf32>
    %93 = vector.shape_cast %92 : vector<8xf32> to vector<8x1xf32>
    %94 = vector.broadcast %93 : vector<8x1xf32> to vector<8x8xf32>
    %95 = arith.subf %91, %94 : vector<8x8xf32>
    %96 = math.exp %95 : vector<8x8xf32>
    %cst_30 = arith.constant dense<0.000000e+00> : vector<8xf32>
    %97 = vector.multi_reduction <add>, %96, %cst_30 [1] : vector<8x8xf32> to vector<8xf32>
    %98 = vector.shape_cast %97 : vector<8xf32> to vector<8x1xf32>
    %99 = tpu.reciprocal %98 {approx = true} : vector<8x1xf32> -> vector<8x1xf32>
    %100 = vector.broadcast %99 : vector<8x1xf32> to vector<8x8xf32>
    %101 = arith.mulf %96, %100 : vector<8x8xf32>
    %102 = arith.truncf %101 : vector<8x8xf32> to vector<8x8xbf16>
    %cst_31 = arith.constant dense<0.000000e+00> : vector<8x8xf32>
    %103 = tpu.matmul %102, %90, %cst_31 {dimension_numbers = #tpu.dot_dimension_numbers<[1], [0], [0], [1], [0, 0, 1, 1], [], []>} : vector<8x8xbf16>, vector<8x8xbf16>, vector<8x8xf32> -> vector<8x8xf32>
    %104 = arith.truncf %103 : vector<8x8xf32> to vector<8x8xbf16>
    %c16 = arith.constant 16 : index
    %c0_32 = arith.constant 0 : index
    %105 = vector.load %arg7[%c16, %c0_32] : memref<32x32xbf16, #tpu.memory_space<vmem>>, vector<8x32xbf16>
    %cst_33 = arith.constant dense<0.000000e+00> : vector<8x32xf32>
    %106 = tpu.matmul %104, %105, %cst_33 {dimension_numbers = #tpu.dot_dimension_numbers<[1], [0], [0], [1], [0, 0, 1, 1], [], []>} : vector<8x8xbf16>, vector<8x32xbf16>, vector<8x32xf32> -> vector<8x32xf32>
    %107 = arith.addf %84, %106 : vector<8x32xf32>
    %108 = vector.extract_strided_slice %35 {offsets = [0, 24], sizes = [8, 8], strides = [1, 1]} : vector<8x32xf32> to vector<8x8xf32>
    %109 = arith.truncf %108 : vector<8x8xf32> to vector<8x8xbf16>
    %110 = vector.extract_strided_slice %36 {offsets = [0, 24], sizes = [8, 8], strides = [1, 1]} : vector<8x32xf32> to vector<8x8xf32>
    %111 = arith.truncf %110 : vector<8x8xf32> to vector<8x8xbf16>
    %112 = vector.extract_strided_slice %37 {offsets = [0, 24], sizes = [8, 8], strides = [1, 1]} : vector<8x32xf32> to vector<8x8xf32>
    %113 = arith.truncf %112 : vector<8x8xf32> to vector<8x8xbf16>
    %cst_34 = arith.constant dense<0.000000e+00> : vector<8x8xf32>
    %114 = tpu.matmul %109, %111, %cst_34 {dimension_numbers = #tpu.dot_dimension_numbers<[1], [1], [0], [0], [0, 0, 1, 0], [], []>} : vector<8x8xbf16>, vector<8x8xbf16>, vector<8x8xf32> -> vector<8x8xf32>
    %cst_35 = arith.constant dense<0xFF800000> : vector<8xf32>
    %115 = vector.multi_reduction <maximumf>, %114, %cst_35 [1] : vector<8x8xf32> to vector<8xf32>
    %116 = vector.shape_cast %115 : vector<8xf32> to vector<8x1xf32>
    %117 = vector.broadcast %116 : vector<8x1xf32> to vector<8x8xf32>
    %118 = arith.subf %114, %117 : vector<8x8xf32>
    %119 = math.exp %118 : vector<8x8xf32>
    %cst_36 = arith.constant dense<0.000000e+00> : vector<8xf32>
    %120 = vector.multi_reduction <add>, %119, %cst_36 [1] : vector<8x8xf32> to vector<8xf32>
    %121 = vector.shape_cast %120 : vector<8xf32> to vector<8x1xf32>
    %122 = tpu.reciprocal %121 {approx = true} : vector<8x1xf32> -> vector<8x1xf32>
    %123 = vector.broadcast %122 : vector<8x1xf32> to vector<8x8xf32>
    %124 = arith.mulf %119, %123 : vector<8x8xf32>
    %125 = arith.truncf %124 : vector<8x8xf32> to vector<8x8xbf16>
    %cst_37 = arith.constant dense<0.000000e+00> : vector<8x8xf32>
    %126 = tpu.matmul %125, %113, %cst_37 {dimension_numbers = #tpu.dot_dimension_numbers<[1], [0], [0], [1], [0, 0, 1, 1], [], []>} : vector<8x8xbf16>, vector<8x8xbf16>, vector<8x8xf32> -> vector<8x8xf32>
    %127 = arith.truncf %126 : vector<8x8xf32> to vector<8x8xbf16>
    %c24 = arith.constant 24 : index
    %c0_38 = arith.constant 0 : index
    %128 = vector.load %arg7[%c24, %c0_38] : memref<32x32xbf16, #tpu.memory_space<vmem>>, vector<8x32xbf16>
    %cst_39 = arith.constant dense<0.000000e+00> : vector<8x32xf32>
    %129 = tpu.matmul %127, %128, %cst_39 {dimension_numbers = #tpu.dot_dimension_numbers<[1], [0], [0], [1], [0, 0, 1, 1], [], []>} : vector<8x8xbf16>, vector<8x32xbf16>, vector<8x32xf32> -> vector<8x32xf32>
    %130 = arith.addf %107, %129 : vector<8x32xf32>
    %131 = arith.addf %1, %130 : vector<8x32xf32>
    %c0_40 = arith.constant 0 : index
    %c0_41 = arith.constant 0 : index
    %132 = vector.load %arg8[%c0_40, %c0_41] : memref<1x32xf32, #tpu.memory_space<vmem>>, vector<1x32xf32>
    %133 = vector.shape_cast %132 : vector<1x32xf32> to vector<32xf32>
    %134 = vector.shape_cast %133 : vector<32xf32> to vector<1x32xf32>
    %135 = vector.broadcast %134 : vector<1x32xf32> to vector<8x32xf32>
    %136 = arith.addf %131, %135 : vector<8x32xf32>
    %c0_42 = arith.constant 0 : index
    %c0_43 = arith.constant 0 : index
    %137 = vector.load %arg4[%c0_42, %c0_43] : memref<1x32xf32, #tpu.memory_space<vmem>>, vector<1x32xf32>
    %138 = vector.shape_cast %137 : vector<1x32xf32> to vector<32xf32>
    %c0_44 = arith.constant 0 : index
    %c0_45 = arith.constant 0 : index
    %139 = vector.load %arg5[%c0_44, %c0_45] : memref<1x32xf32, #tpu.memory_space<vmem>>, vector<1x32xf32>
    %140 = vector.shape_cast %139 : vector<1x32xf32> to vector<32xf32>
    %cst_46 = arith.constant dense<0.000000e+00> : vector<8xf32>
    %141 = vector.multi_reduction <add>, %136, %cst_46 [1] : vector<8x32xf32> to vector<8xf32>
    %142 = vector.shape_cast %141 : vector<8xf32> to vector<8x1xf32>
    %cst_47 = arith.constant 3.200000e+01 : f32
    %143 = vector.broadcast %cst_47 : f32 to vector<8x1xf32>
    %144 = arith.divf %142, %143 : vector<8x1xf32>
    %145 = arith.mulf %136, %136 : vector<8x32xf32>
    %cst_48 = arith.constant dense<0.000000e+00> : vector<8xf32>
    %146 = vector.multi_reduction <add>, %145, %cst_48 [1] : vector<8x32xf32> to vector<8xf32>
    %147 = vector.shape_cast %146 : vector<8xf32> to vector<8x1xf32>
    %cst_49 = arith.constant 3.200000e+01 : f32
    %148 = vector.broadcast %cst_49 : f32 to vector<8x1xf32>
    %149 = arith.divf %147, %148 : vector<8x1xf32>
    %150 = arith.mulf %144, %144 : vector<8x1xf32>
    %151 = arith.subf %149, %150 : vector<8x1xf32>
    %cst_50 = arith.constant 9.99999974E-6 : f32
    %152 = vector.broadcast %cst_50 : f32 to vector<8x1xf32>
    %153 = arith.addf %151, %152 : vector<8x1xf32>
    %154 = math.rsqrt %153 : vector<8x1xf32>
    %155 = vector.broadcast %144 : vector<8x1xf32> to vector<8x32xf32>
    %156 = arith.subf %136, %155 : vector<8x32xf32>
    %157 = vector.shape_cast %138 : vector<32xf32> to vector<1x32xf32>
    %158 = vector.broadcast %154 : vector<8x1xf32> to vector<8x32xf32>
    %159 = vector.broadcast %157 : vector<1x32xf32> to vector<8x32xf32>
    %160 = arith.mulf %158, %159 : vector<8x32xf32>
    %161 = arith.mulf %156, %160 : vector<8x32xf32>
    %162 = vector.shape_cast %140 : vector<32xf32> to vector<1x32xf32>
    %163 = vector.broadcast %162 : vector<1x32xf32> to vector<8x32xf32>
    %164 = arith.addf %161, %163 : vector<8x32xf32>
    %165 = arith.truncf %164 : vector<8x32xf32> to vector<8x32xbf16>
    %c0_51 = arith.constant 0 : index
    %c0_52 = arith.constant 0 : index
    %166 = vector.load %arg9[%c0_51, %c0_52] : memref<32x128xbf16, #tpu.memory_space<vmem>>, vector<32x128xbf16>
    %cst_53 = arith.constant dense<0.000000e+00> : vector<8x128xf32>
    %167 = tpu.matmul %165, %166, %cst_53 {dimension_numbers = #tpu.dot_dimension_numbers<[1], [0], [0], [1], [0, 0, 1, 1], [], []>} : vector<8x32xbf16>, vector<32x128xbf16>, vector<8x128xf32> -> vector<8x128xf32>
    %c0_54 = arith.constant 0 : index
    %c0_55 = arith.constant 0 : index
    %168 = vector.load %arg10[%c0_54, %c0_55] : memref<1x128xf32, #tpu.memory_space<vmem>>, vector<1x128xf32>
    %169 = vector.shape_cast %168 : vector<1x128xf32> to vector<128xf32>
    %170 = vector.shape_cast %169 : vector<128xf32> to vector<1x128xf32>
    %171 = vector.broadcast %170 : vector<1x128xf32> to vector<8x128xf32>
    %172 = arith.addf %167, %171 : vector<8x128xf32>
    %cst_56 = arith.constant 5.000000e-01 : f32
    %173 = vector.broadcast %cst_56 : f32 to vector<8x128xf32>
    %174 = arith.mulf %173, %172 : vector<8x128xf32>
    %cst_57 = arith.constant 0.707106769 : f32
    %175 = vector.broadcast %cst_57 : f32 to vector<8x128xf32>
    %176 = arith.mulf %172, %175 : vector<8x128xf32>
    %cst_58 = arith.constant 0.000000e+00 : f32
    %177 = vector.broadcast %cst_58 : f32 to vector<8x128xf32>
    %178 = arith.cmpf oge, %176, %177 : vector<8x128xf32>
    %cst_59 = arith.constant 1.000000e+00 : f32
    %cst_60 = arith.constant -1.000000e+00 : f32
    %179 = vector.broadcast %cst_59 : f32 to vector<8x128xf32>
    %180 = vector.broadcast %cst_60 : f32 to vector<8x128xf32>
    %181 = arith.select %178, %179, %180 : vector<8x128xi1>, vector<8x128xf32>
    %182 = math.absf %176 : vector<8x128xf32>
    %cst_61 = arith.constant 0.327591091 : f32
    %183 = vector.broadcast %cst_61 : f32 to vector<8x128xf32>
    %184 = arith.mulf %183, %182 : vector<8x128xf32>
    %cst_62 = arith.constant 1.000000e+00 : f32
    %185 = vector.broadcast %cst_62 : f32 to vector<8x128xf32>
    %186 = arith.addf %185, %184 : vector<8x128xf32>
    %187 = tpu.reciprocal %186 {approx = true} : vector<8x128xf32> -> vector<8x128xf32>
    %cst_63 = arith.constant 1.06140542 : f32
    %188 = vector.broadcast %cst_63 : f32 to vector<8x128xf32>
    %189 = arith.mulf %188, %187 : vector<8x128xf32>
    %cst_64 = arith.constant -1.45315206 : f32
    %190 = vector.broadcast %cst_64 : f32 to vector<8x128xf32>
    %191 = arith.addf %189, %190 : vector<8x128xf32>
    %192 = arith.mulf %191, %187 : vector<8x128xf32>
    %cst_65 = arith.constant 1.42141378 : f32
    %193 = vector.broadcast %cst_65 : f32 to vector<8x128xf32>
    %194 = arith.addf %192, %193 : vector<8x128xf32>
    %195 = arith.mulf %194, %187 : vector<8x128xf32>
    %cst_66 = arith.constant -0.284496725 : f32
    %196 = vector.broadcast %cst_66 : f32 to vector<8x128xf32>
    %197 = arith.addf %195, %196 : vector<8x128xf32>
    %198 = arith.mulf %197, %187 : vector<8x128xf32>
    %cst_67 = arith.constant 0.254829586 : f32
    %199 = vector.broadcast %cst_67 : f32 to vector<8x128xf32>
    %200 = arith.addf %198, %199 : vector<8x128xf32>
    %201 = arith.mulf %200, %187 : vector<8x128xf32>
    %cst_68 = arith.constant 0.000000e+00 : f32
    %202 = vector.broadcast %cst_68 : f32 to vector<8x128xf32>
    %203 = arith.subf %202, %182 : vector<8x128xf32>
    %204 = arith.mulf %203, %182 : vector<8x128xf32>
    %205 = math.exp %204 : vector<8x128xf32>
    %206 = arith.mulf %201, %205 : vector<8x128xf32>
    %cst_69 = arith.constant 1.000000e+00 : f32
    %207 = vector.broadcast %cst_69 : f32 to vector<8x128xf32>
    %208 = arith.subf %207, %206 : vector<8x128xf32>
    %209 = arith.mulf %181, %208 : vector<8x128xf32>
    %cst_70 = arith.constant 1.000000e+00 : f32
    %210 = vector.broadcast %cst_70 : f32 to vector<8x128xf32>
    %211 = arith.addf %210, %209 : vector<8x128xf32>
    %212 = arith.mulf %174, %211 : vector<8x128xf32>
    %213 = arith.truncf %212 : vector<8x128xf32> to vector<8x128xbf16>
    %c0_71 = arith.constant 0 : index
    %c0_72 = arith.constant 0 : index
    %214 = vector.load %arg11[%c0_71, %c0_72] : memref<128x32xbf16, #tpu.memory_space<vmem>>, vector<128x32xbf16>
    %cst_73 = arith.constant dense<0.000000e+00> : vector<8x32xf32>
    %215 = tpu.matmul %213, %214, %cst_73 {dimension_numbers = #tpu.dot_dimension_numbers<[1], [0], [0], [1], [0, 0, 1, 1], [], []>} : vector<8x128xbf16>, vector<128x32xbf16>, vector<8x32xf32> -> vector<8x32xf32>
    %c0_74 = arith.constant 0 : index
    %c0_75 = arith.constant 0 : index
    %216 = vector.load %arg12[%c0_74, %c0_75] : memref<1x32xf32, #tpu.memory_space<vmem>>, vector<1x32xf32>
    %217 = vector.shape_cast %216 : vector<1x32xf32> to vector<32xf32>
    %218 = vector.shape_cast %217 : vector<32xf32> to vector<1x32xf32>
    %219 = vector.broadcast %218 : vector<1x32xf32> to vector<8x32xf32>
    %220 = arith.addf %215, %219 : vector<8x32xf32>
    %221 = arith.addf %136, %220 : vector<8x32xf32>
    %c0_76 = arith.constant 0 : index
    %c0_77 = arith.constant 0 : index
    %c0_78 = arith.constant 0 : index
    %222 = vector.load %arg13[%c0_76, %c0_77, %c0_78] : memref<1x8x32xf32, #tpu.memory_space<vmem>>, vector<1x8x32xf32>
    %223 = vector.shape_cast %222 : vector<1x8x32xf32> to vector<8x32xf32>
    %224 = vector.shape_cast %221 : vector<8x32xf32> to vector<1x8x32xf32>
    tpu.vector_store %arg13[%c0_76, %c0_77, %c0_78], %224 {strides = array<i32>} : memref<1x8x32xf32, #tpu.memory_space<vmem>>, vector<1x8x32xf32>,
    return
  }
  func.func @transform_0(%arg0: i32) -> (i32, i32, i32) {
    %c0_i32 = arith.constant 0 : i32
    %c0_i32_0 = arith.constant 0 : i32
    %c0_i32_1 = arith.constant 0 : i32
    return %arg0, %c0_i32, %c0_i32_0 : i32, i32, i32
  }
  func.func @transform_1(%arg0: i32) -> (i32, i32) {
    %c0_i32 = arith.constant 0 : i32
    %c0_i32_0 = arith.constant 0 : i32
    %c0_i32_1 = arith.constant 0 : i32
    return %c0_i32, %c0_i32_0 : i32, i32
  }
  func.func @transform_2(%arg0: i32) -> (i32, i32) {
    %c0_i32 = arith.constant 0 : i32
    %c0_i32_0 = arith.constant 0 : i32
    %c0_i32_1 = arith.constant 0 : i32
    return %c0_i32, %c0_i32_0 : i32, i32
  }
  func.func @transform_3(%arg0: i32) -> (i32, i32) {
    %c0_i32 = arith.constant 0 : i32
    %c0_i32_0 = arith.constant 0 : i32
    %c0_i32_1 = arith.constant 0 : i32
    return %c0_i32, %c0_i32_0 : i32, i32
  }
  func.func @transform_4(%arg0: i32) -> (i32, i32) {
    %c0_i32 = arith.constant 0 : i32
    %c0_i32_0 = arith.constant 0 : i32
    %c0_i32_1 = arith.constant 0 : i32
    return %c0_i32, %c0_i32_0 : i32, i32
  }
  func.func @transform_5(%arg0: i32) -> (i32, i32) {
    %c0_i32 = arith.constant 0 : i32
    %c0_i32_0 = arith.constant 0 : i32
    %c0_i32_1 = arith.constant 0 : i32
    return %c0_i32, %c0_i32_0 : i32, i32
  }
  func.func @transform_6(%arg0: i32) -> (i32, i32) {
    %c0_i32 = arith.constant 0 : i32
    %c0_i32_0 = arith.constant 0 : i32
    %c0_i32_1 = arith.constant 0 : i32
    return %c0_i32, %c0_i32_0 : i32, i32
  }
  func.func @transform_7(%arg0: i32) -> (i32, i32) {
    %c0_i32 = arith.constant 0 : i32
    %c0_i32_0 = arith.constant 0 : i32
    %c0_i32_1 = arith.constant 0 : i32
    return %c0_i32, %c0_i32_0 : i32, i32
  }
  func.func @transform_8(%arg0: i32) -> (i32, i32) {
    %c0_i32 = arith.constant 0 : i32
    %c0_i32_0 = arith.constant 0 : i32
    %c0_i32_1 = arith.constant 0 : i32
    return %c0_i32, %c0_i32_0 : i32, i32
  }
  func.func @transform_9(%arg0: i32) -> (i32, i32) {
    %c0_i32 = arith.constant 0 : i32
    %c0_i32_0 = arith.constant 0 : i32
    %c0_i32_1 = arith.constant 0 : i32
    return %c0_i32, %c0_i32_0 : i32, i32
  }
  func.func @transform_10(%arg0: i32) -> (i32, i32) {
    %c0_i32 = arith.constant 0 : i32
    %c0_i32_0 = arith.constant 0 : i32
    %c0_i32_1 = arith.constant 0 : i32
    return %c0_i32, %c0_i32_0 : i32, i32
  }
  func.func @transform_11(%arg0: i32) -> (i32, i32) {
    %c0_i32 = arith.constant 0 : i32
    %c0_i32_0 = arith.constant 0 : i32
    %c0_i32_1 = arith.constant 0 : i32
    return %c0_i32, %c0_i32_0 : i32, i32
  }
  func.func @transform_12(%arg0: i32) -> (i32, i32, i32) {
    %c0_i32 = arith.constant 0 : i32
    %c0_i32_0 = arith.constant 0 : i32
    %c0_i32_1 = arith.constant 0 : i32
    return %arg0, %c0_i32, %c0_i32_0 : i32, i32, i32
  }
}

</mosaic_0001>

<bundles_post_ra>
// kernel: tpu_custom_call.1
= control target key start
LH: loop header
LB: loop body
LE: loop exit
PB: predicated region body
PF: predicated region fallthrough
CT: control target
= control target key end

     0   :  { %s2181_s0 = inlined_call_operand.vmem [shape: f32[2,8,32], index: 0, kind: input, shape index: {}]   ;;  %s2182_s1 = inlined_call_operand.vmem [shape: f32[1,32], index: 1, kind: input, shape index: {}]   ;;  %s2183_s2 = inlined_call_operand.vmem [shape: f32[1,32], index: 2, kind: input, shape index: {}]   ;;  %s2184_s3 = inlined_call_operand.vmem [shape: f32[1,32], index: 3, kind: input, shape index: {}]   ;;  %s2185_s4 = inlined_call_operand.vmem [shape: f32[1,32], index: 4, kind: input, shape index: {}]   ;;  %s2186_s5 = inlined_call_operand.vmem [shape: bf16[32,96], index: 5, kind: input, shape index: {}]   ;;  %s2187_s6 = inlined_call_operand.vmem [shape: bf16[32,32], index: 6, kind: input, shape index: {}]   ;;  %s2188_s7 = inlined_call_operand.vmem [shape: f32[1,32], index: 7, kind: input, shape index: {}]   ;;  %s2189_s8 = inlined_call_operand.vmem [shape: bf16[32,128], index: 8, kind: input, shape index: {}]   ;;  %s2190_s9 = inlined_call_operand.vmem [shape: f32[1,128], index: 9, kind: input, shape index: {}]   ;;  %s2191_s10 = inlined_call_operand.vmem [shape: bf16[128,32], index: 10, kind: input, shape index: {}]   ;;  %s2192_s11 = inlined_call_operand.vmem [shape: f32[1,32], index: 11, kind: input, shape index: {}]   ;;  %s2193_s12 = inlined_call_operand.hbm [shape: f32[2,8,32], index: 12, kind: output, shape index: {}]  }
   0x1   :  { %2194 = sst [smem:[#allocation5_spill]] %s2181_s0 }
   0x2   :  { %2195 = sst [smem:[#allocation6_spill]] %s2182_s1 }
   0x3   :  { %17 = vsyncpa [#allocation3], 0 }
   0x4   :  { %19 = vsyncpa [#allocation3 + $0x1], 0  ;;  %s1884_s21 = smov 0   ;;  %s1886_s22 = smov 0  }
   0x5   :  { %s1888_s23 = smov 0   ;;  %s1890_s24 = smov 0  }
   0x6 LB: > { %s1905_s25 = sadd.s32 4294967295, %s1802_s24   ;;  %s1463_s26 = sadd.s32 4294967294, %s1802_s24   ;;  %s1802_s24 = sphi %s1890_s24, %s2203_s24   ;;  %s1798_s23 = sphi %s1888_s23, %s2202_s23   ;;  %s1794_s22 = sphi %s1886_s22, %s2201_s22   ;;  %s1790_s21 = sphi %s1884_s21, %s2200_s21  }
   0x7   : > { %s1909_s27 = sadd.s32 1, %s1802_s24   ;;  %s289_s28 = sadd.s32 1, %s1798_s23 }
   0x8   : > { %s286_s29 = ssub.s32 %s1802_s24, %s1909_s27  ;;  %p299_p0 = scmp.ne.s32.totalorder %s1798_s23, %s1794_s22 }
   0x9   : > { %p287_p1 = scmp.eq.s32.totalorder %s286_s29, 0  ;;  %p300_p2 = scmp.eq.s32.totalorder %s1905_s25, 1 }
   0xa   : > { %p305_p3 = scmp.ne.s32.totalorder %s1794_s22, %s1790_s21  ;;  %p306_p4 = scmp.eq.s32.totalorder %s1463_s26, 1 }
   0xb   : > { %s1920_s30 = scalar_select %p287_p1, %s1798_s23, %s289_s28  }
   0xc   : > { %p1922_p5 = por %p300_p2, %p299_p0  ;;  %p1926_p6 = por %p306_p4, %p305_p3 }
   0xd   : > { %p1466_p7 = scmp.ge.s32.totalorder %s1802_s24, 1  ;;  %p364_p8 = scmp.lt.s32.totalorder %s1802_s24, 3 }
   0xf   : > { %p365_p9 = pnand %p1466_p7, %p364_p8 }
  0x10   : > { %p405_p10 = scmp.lt.s32.totalorder (!%p365_p9), %s1905_s25, 1  ;;  %s2198_s0 = sld [smem:[#allocation5_spill]] (!%p365_p9) }
  0x11   : > { %368 = sbr.rel (%p365_p9) target bundleno = 3784 (0xec8), region = 68  ;;  %s2199_s1 = sld [smem:[#allocation6_spill]] (!%p365_p9) }
  0x12   : > { %s1807_s20 = smov (!%p365_p9), 96   ;;  %s1808_s26 = smov (!%p365_p9), 88  }
  0x13   : > { %s1809_s28 = smov (!%p365_p9), 120   ;;  %s1810_s29 = smov (!%p365_p9), 56  }
  0x14   : > { %s1813_s17 = smov (!%p365_p9), 48  }
  0x16   : > { %s406_s15 = scalar_select %p405_p10, %s1905_s25, 1  ;;  %vm413_vm0 = vcmask 261120   ;;  %v1706_v4 = vld [vmem:[%s2186_s5 + $0x8] sm:$0xff]   ;;  %v1804_v5 = vmov 0.0   ;;  %vm1805_vm1 = vmmov 0   ;;  %v1707_v6 = vld [vmem:[%s2186_s5] sm:$0xff]  }
  0x17   : > { %1545 = vmatprep.subr.bf16.mxu1 %v1804_v5  ;;  %1549 = vmatprep.mubr.msk.bf16.mxu1 %vm1805_vm1, %v1804_v5  ;;  %v1469_v14 = vld [vmem:[%s2199_s1] ss:$0 sm:$0xff]  ;;  %vm510_vm2 = vcmask 64512   ;;  %vm574_vm3 = vcmask 1043456  }
  0x18   : > { %s1468_s16 = sshll.u32 %s406_s15, 3  ;;  %1546 = vmatpush3.bf16.msra.mxu1 %v1706_v4  ;;  %1571 = vmatprep.subr.bf16.mxu0 %v1804_v5  ;;  %v1470_v18 = vld [vmem:[%s2183_s2] ss:$0 sm:$0xff]  ;;  %s1811_s15 = smov 80  }
  0x19   : > { %s408_s19 = scalar_lea.vmem %s2198_s0, %s1468_s16  ;;  %1547 = vmatprep.subr.bf16.mxu1 %v1804_v5  ;;  %1573 = vmatprep.mubr.msk.bf16.mxu0 %vm1805_vm1, %v1804_v5  ;;  %s1812_s16 = smov 112  }
  0x1a   : > { %v1937_v0 = vld [vmem:[%s408_s19] sm:$0xff]  ;;  %s1806_s19 = smov 64  }
  0x1b   : > { %v414_v1 = vsel %vm413_vm0, %v1937_v0, 0.0  ;;  %v419_v2 = vmul.f32 %v1937_v0, %v1937_v0 }
  0x1c   : > { %415 = vadd.xlane.f32.xlu0 %v414_v1  ;;  %1548 = vmatpush3.bf16.msra.mxu1 %v1707_v6 }
  0x1d   : > { %v420_v3 = vsel %vm413_vm0, %v419_v2, 0.0  ;;  %1553 = vmatprep.subr.bf16.mxu1 %v1804_v5 }
  0x20   : > { %421 = vadd.xlane.f32.xlu0 %v420_v3  ;;  %v732_v3 = vld [vmem:[%s2187_s6 + $0x4] sm:$0xf] }
  0x21   : > { %v737_v4 = vsel %vm574_vm3, %v732_v3, 0 }
  0xa5   : > { %v416_v7 = vpop.xlane.xlu0 %415 }
  0xa6   : > { %v418_v8 = vmul.f32 0.03125, %v416_v7 }
  0xa8   : > { %v424_v10 = vmul.f32 %v418_v8, %v418_v8  ;;  %v428_v16 = vsub.f32 %v1937_v0, %v418_v8  ;;  %v619_v8 = vld [vmem:[%s2187_s6] sm:$0xf] }
  0xa9   : > { %v422_v9 = vpop.xlane.xlu0 %421 }
  0xaa   : > { %v423_v11 = vmul.f32 0.03125, %v422_v9 }
  0xac   : > { %v425_v12 = vsub.f32 %v423_v11, %v424_v10  ;;  %v783_v11 = vsel %vm574_vm3, %v619_v8, 0 }
  0xae   : > { %v426_v13 = vadd.f32 1e-05, %v425_v12 }
  0xb0   : > { %1718 = vrsqrt.f32 %v426_v13 }
  0xbd   : > { %v1719_v15 = vpop.eup %1718 }
  0xbe   : > { %v435_v17 = vmul.f32 %v1719_v15, %v1469_v14 }
  0xc0   : > { %v436_v19 = vmul.f32 %v435_v17, %v428_v16 }
  0xc2   : > { %v443_v20 = vadd.f32 %v1470_v18, %v436_v19 }
  0xc4   : > { %v444_v21 = vpack.c.bf16 %v443_v20, %v443_v20 }
  0xc6   : > { %1550 = vmatmul.mubr.msk.bf16.vlgmr.msra.gmra.mxu1 %vm413_vm0, %v444_v21 }
  0xc7   : > { %1555 = vmatprep.mubr.msk.bf16.mxu1 %vm1805_vm1, %v1804_v5 }
 0x186   : > { %v498_v22 = vpop.f32.mrf.mxu1 }
 0x187   : > { %v1968_v23 = vpack.c.bf16 %v498_v22, %v498_v22  ;;  %v504_v29 = vmul.f32 0.35355338, %v498_v22 }
 0x188   : > { %v1551_v24 = vpop.f32.mrf.mxu1 }
 0x189   : > { %569 = vrot.lane.b32.xlu0 %v1968_v23, %s1806_s19  ;;  %508 = vrot.lane.b32.xlu1 %v1968_v23, %s1807_s20  ;;  %v1974_v31 = vpack.c.bf16 %v504_v29, %v504_v29 }
 0x18a   : > { %v501_v25 = vpop.f32.mrf.mxu1 }
 0x18c   : > { %v1552_v26 = vpop.f32.mrf.mxu1 }
 0x1fb   : > { %v509_v27 = vpop.permute.xlu1 %508  ;;  %v570_v30 = vpop.permute.xlu0 %569 }
 0x1fc   : > { %v515_v28 = vsel %vm510_vm2, %v509_v27, 0  ;;  %v576_v32 = vsel %vm574_vm3, %v570_v30, 0 }
 0x1fd   : > { %1554 = vmatpush3.bf16.xpose.msra.mxu1 %v515_v28 }
 0x1fe   : > { %1559 = vmatprep.subr.bf16.mxu1 %v1804_v5 }
 0x204   : > { %1556 = vmatmul.mubr.msk.bf16.vlgmr.msra.gmra.mxu1 %vm510_vm2, %v1974_v31 }
 0x205   : > { %1560 = vmatpush3.bf16.msra.mxu1 %v576_v32  ;;  %1561 = vmatprep.mubr.msk.bf16.mxu1 %vm1805_vm1, %v1804_v5 }
 0x206   : > { %1565 = vmatprep.subr.bf16.mxu1 %v1804_v5 }
 0x2c4   : > { %v551_v33 = vpop.f32.mrf.mxu1 }
 0x2c5   : > { %v557_v34 = vsel %vm510_vm2, %v551_v33, -inf }
 0x2c6   : > { %558 = vmax.xlane.f32.xlu1 %v557_v34  ;;  %v1557_v35 = vpop.f32.mrf.mxu1 }
 0x2c8   : > { %v554_v36 = vpop.f32.mrf.mxu1 }
 0x2ca   : > { %v1558_v37 = vpop.f32.mrf.mxu1 }
 0x34f   : > { %v559_v38 = vpop.xlane.xlu1 %558 }
 0x350   : > { %v560_v39 = vsub.f32 %v551_v33, %v559_v38 }
 0x352   : > { %v561_v40 = vmul.f32 1.442695, %v560_v39 }
 0x354   : > { %1720 = vpow2.f32 %v561_v40 }
 0x361   : > { %v1721_v41 = vpop.eup %1720 }
 0x362   : > { %v563_v42 = vsel %vm510_vm2, %v1721_v41, 0.0 }
 0x363   : > { %564 = vadd.xlane.f32.xlu0 %v563_v42 }
 0x379   : > { %623 = vrot.lane.b32.xlu0 %v1968_v23, %s1808_s26  ;;  %s402_s26 = sand.u32 1, %s1794_s22  }
 0x37d   : > { %621 = vrot.lane.b32.xlu0 %v1974_v31, %s1809_s28  ;;  %s1814_s28 = smov 72  }
 0x3ec   : > { %v565_v43 = vpop.xlane.xlu0 %564 }
 0x3ed   : > { %1722 = vrcp.f32 %v565_v43 }
 0x3f0   : > { %v624_v46 = vpop.permute.xlu0 %623 }
 0x3f1   : > { %v629_v48 = vsel %vm510_vm2, %v624_v46, 0 }
 0x3f4   : > { %v622_v49 = vpop.permute.xlu0 %621 }
 0x3fa   : > { %v1723_v44 = vpop.eup %1722 }
 0x3fb   : > { %v567_v45 = vmul.f32 %v1723_v44, %v1721_v41 }
 0x3fd   : > { %v568_v47 = vpack.c.bf16 %v567_v45, %v567_v45 }
 0x3ff   : > { %1562 = vmatmul.mubr.msk.bf16.vlgmr.msra.gmra.mxu1 %vm510_vm2, %v568_v47 }
 0x400   : > { %1566 = vmatpush3.bf16.xpose.msra.mxu1 %v629_v48  ;;  %1567 = vmatprep.mubr.msk.bf16.mxu1 %vm1805_vm1, %v1804_v5 }
 0x401   : > { %1577 = vmatprep.subr.bf16.mxu1 %v1804_v5 }
 0x407   : > { %1568 = vmatmul.mubr.msk.bf16.vlgmr.msra.gmra.mxu1 %vm510_vm2, %v622_v49 }
 0x408   : > { %1579 = vmatprep.mubr.msk.bf16.mxu1 %vm1805_vm1, %v1804_v5  ;;  %1578 = vmatpush3.bf16.msra.mxu1 %v737_v4 }
 0x409   : > { %1589 = vmatprep.subr.bf16.mxu1 %v1804_v5 }
 0x4bf   : > { %v612_v50 = vpop.f32.mrf.mxu1 }
 0x4c0   : > { %v618_v13 = vpack.c.bf16 %v612_v50, %v612_v50 }
 0x4c1   : > { %v1563_v51 = vpop.f32.mrf.mxu1 }
 0x4c3   : > { %v615_v52 = vpop.f32.mrf.mxu1 }
 0x4c5   : > { %v1564_v53 = vpop.f32.mrf.mxu1 }
 0x4c7   : > { %v665_v54 = vpop.f32.mrf.mxu1 }
 0x4c8   : > { %v671_v55 = vsel %vm510_vm2, %v665_v54, -inf }
 0x4c9   : > { %672 = vmax.xlane.f32.xlu1 %v671_v55  ;;  %v1569_v56 = vpop.f32.mrf.mxu1 }
 0x4cb   : > { %v668_v57 = vpop.f32.mrf.mxu1 }
 0x4cd   : > { %v1570_v58 = vpop.f32.mrf.mxu1 }
 0x4da   : > { %683 = vrot.lane.b32.xlu1 %v1968_v23, %s1810_s29  ;;  %s1815_s29 = smov 104  }
 0x4de   : > { %827 = vrot.lane.b32.xlu1 %v1968_v23, %s1811_s15 }
 0x4e2   : > { %825 = vrot.lane.b32.xlu1 %v1974_v31, %s1812_s16  ;;  %s1503_s16 = sshll.u32 %s1905_s25, 7  ;;  %s1391_s25 = scalar_lea.sflag [#allocation3], %s402_s26 }
 0x4e3   : > { %s2139_s0 = scalar_lea.hbm %s2193_s12, %s1503_s16 }
 0x552   : > { %v673_v59 = vpop.xlane.xlu1 %672 }
 0x553   : > { %v674_v60 = vsub.f32 %v665_v54, %v673_v59 }
 0x555   : > { %v675_v61 = vmul.f32 1.442695, %v674_v60 }
 0x556   : > { %v684_v62 = vpop.permute.xlu1 %683 }
 0x557   : > { %1724 = vpow2.f32 %v675_v61  ;;  %v689_v63 = vsel %vm574_vm3, %v684_v62, 0 }
 0x558   : > { %1572 = vmatpush3.bf16.msra.mxu0 %v689_v63 }
 0x559   : > { %1583 = vmatprep.subr.bf16.mxu0 %v1804_v5 }
 0x55a   : > { %v828_v15 = vpop.permute.xlu1 %827 }
 0x55b   : > { %v833_v19 = vsel %vm510_vm2, %v828_v15, 0 }
 0x55e   : > { %v826_v24 = vpop.permute.xlu1 %825 }
 0x564   : > { %v1725_v1 = vpop.eup %1724 }
 0x565   : > { %v677_v2 = vsel %vm510_vm2, %v1725_v1, 0.0 }
 0x566   : > { %678 = vadd.xlane.f32.xlu0 %v677_v2 }
 0x57c   : > { %887 = vrot.lane.b32.xlu0 %v1968_v23, %s1813_s17  ;;  %s1816_s17 = smov 40  }
 0x5ef   : > { %v679_v6 = vpop.xlane.xlu0 %678 }
 0x5f0   : > { %1726 = vrcp.f32 %v679_v6 }
 0x5f3   : > { %v888_v12 = vpop.permute.xlu0 %887 }
 0x5f4   : > { %v893_v14 = vsel %vm574_vm3, %v888_v12, 0 }
 0x5fd   : > { %v1727_v7 = vpop.eup %1726 }
 0x5fe   : > { %v681_v9 = vmul.f32 %v1727_v7, %v1725_v1 }
 0x600   : > { %v682_v10 = vpack.c.bf16 %v681_v9, %v681_v9 }
 0x602   : > { %1574 = vmatmul.mubr.msk.bf16.vlgmr.msra.gmra.mxu0 %vm510_vm2, %v682_v10 }
 0x603   : > { %1584 = vmatpush3.bf16.msra.mxu0 %v783_v11  ;;  %1585 = vmatprep.mubr.msk.bf16.mxu0 %vm1805_vm1, %v1804_v5 }
 0x604   : > { %1595 = vmatprep.subr.bf16.mxu0 %v1804_v5 }
 0x60a   : > { %1586 = vmatmul.mubr.msk.bf16.vlgmr.msra.gmra.mxu0 %vm510_vm2, %v618_v13 }
 0x60b   : > { %1596 = vmatpush3.bf16.msra.mxu0 %v893_v14  ;;  %1597 = vmatprep.mubr.msk.bf16.mxu0 %vm1805_vm1, %v1804_v5 }
 0x60c   : > { %1607 = vmatprep.subr.bf16.mxu0 %v1804_v5 }
 0x6c2   : > { %v725_v16 = vpop.f32.mrf.mxu0 }
 0x6c3   : > { %v731_v17 = vpack.c.bf16 %v725_v16, %v725_v16 }
 0x6c4   : > { %v1575_v18 = vpop.f32.mrf.mxu0 }
 0x6c5   : > { %1580 = vmatmul.mubr.msk.bf16.vlgmr.msra.gmra.mxu1 %vm510_vm2, %v731_v17 }
 0x6c6   : > { %1590 = vmatpush3.bf16.xpose.msra.mxu1 %v833_v19  ;;  %v728_v20 = vpop.f32.mrf.mxu0  ;;  %1591 = vmatprep.mubr.msk.bf16.mxu1 %vm1805_vm1, %v1804_v5 }
 0x6c7   : > { %1601 = vmatprep.subr.bf16.mxu1 %v1804_v5 }
 0x6c8   : > { %v1576_v21 = vpop.f32.mrf.mxu0 }
 0x6ca   : > { %v2025_v22 = vpop.f32.mrf.mxu0 }
 0x6cc   : > { %v1587_v25 = vpop.f32.mrf.mxu0 }
 0x6cd   : > { %1592 = vmatmul.mubr.msk.bf16.vlgmr.msra.gmra.mxu1 %vm510_vm2, %v826_v24  ;;  %v1486_v25 = vld [vmem:[%s2188_s7] ss:$0 sm:$0xff] }
 0x6ce   : > { %v822_v26 = vpop.f32.mrf.mxu0  ;;  %1603 = vmatprep.mubr.msk.bf16.mxu1 %vm1805_vm1, %v1804_v5 }
 0x6d0   : > { %v1588_v27 = vpop.f32.mrf.mxu0 }
 0x785   : > { %v2030_v28 = vpop.f32.mrf.mxu1 }
 0x786   : > { %v820_v6 = vadd.f32 %v2025_v22, %v2030_v28 }
 0x787   : > { %v1581_v29 = vpop.f32.mrf.mxu1 }
 0x789   : > { %v776_v30 = vpop.f32.mrf.mxu1 }
 0x78b   : > { %v1582_v32 = vpop.f32.mrf.mxu1 }
 0x78d   : > { %v869_v33 = vpop.f32.mrf.mxu1 }
 0x78e   : > { %v875_v34 = vsel %vm510_vm2, %v869_v33, -inf }
 0x78f   : > { %876 = vmax.xlane.f32.xlu1 %v875_v34  ;;  %v1593_v35 = vpop.f32.mrf.mxu1 }
 0x790   : > { %v1708_v35 = vld [vmem:[%s2189_s8 + $0x8] sm:$0xff]  }
 0x791   : > { %v872_v36 = vpop.f32.mrf.mxu1 }
 0x793   : > { %v1594_v37 = vpop.f32.mrf.mxu1 }
 0x818   : > { %v877_v38 = vpop.xlane.xlu1 %876 }
 0x819   : > { %v878_v39 = vsub.f32 %v869_v33, %v877_v38 }
 0x81b   : > { %v879_v40 = vmul.f32 1.442695, %v878_v39 }
 0x81d   : > { %1728 = vpow2.f32 %v879_v40 }
 0x82a   : > { %v1729_v41 = vpop.eup %1728 }
 0x82b   : > { %v881_v42 = vsel %vm510_vm2, %v1729_v41, 0.0 }
 0x82c   : > { %882 = vadd.xlane.f32.xlu0 %v881_v42 }
 0x842   : > { %986 = vrot.lane.b32.xlu0 %v1968_v23, %s1814_s28  ;;  %s1467_s28 = sshll.u32 %s402_s26, 3 }
 0x846   : > { %984 = vrot.lane.b32.xlu0 %v1974_v31, %s1815_s29  ;;  %v936_v31 = vld [vmem:[%s2187_s6 + $0x8] sm:$0xf]  ;;  %s1818_s29 = smov [#allocation2]  }
 0x847   : > { %v941_v50 = vsel %vm574_vm3, %v936_v31, 0  ;;  %s1746_s15 = sshll.u32 %s1818_s29, 4  ;;  %s1747_s15 = int_to_ptr.vmem [resolvable:$false] %s1746_s15 }
 0x848   : > { %1602 = vmatpush3.bf16.msra.mxu1 %v941_v50  ;;  %v1710_v50 = vld [vmem:[%s2191_s10 + $0x38] sm:$0xff]   ;;  %s1748_s16 = scalar_lea.vmem %s1747_s15, 256 }
 0x849   : > { %1613 = vmatprep.subr.bf16.mxu1 %v1804_v5 }
 0x8b5   : > { %v883_v43 = vpop.xlane.xlu0 %882 }
 0x8b6   : > { %1730 = vrcp.f32 %v883_v43  ;;  %v1487_v43 = vld [vmem:[%s2184_s3] ss:$0 sm:$0xff] }
 0x8b9   : > { %v987_v46 = vpop.permute.xlu0 %986 }
 0x8ba   : > { %v992_v48 = vsel %vm510_vm2, %v987_v46, 0 }
 0x8bd   : > { %v985_v49 = vpop.permute.xlu0 %984 }
 0x8c3   : > { %v1731_v44 = vpop.eup %1730 }
 0x8c4   : > { %v885_v45 = vmul.f32 %v1731_v44, %v1729_v41 }
 0x8c6   : > { %v886_v47 = vpack.c.bf16 %v885_v45, %v885_v45 }
 0x8c8   : > { %1598 = vmatmul.mubr.msk.bf16.vlgmr.msra.gmra.mxu0 %vm510_vm2, %v886_v47  ;;  %v1488_v47 = vld [vmem:[%s2185_s4] ss:$0 sm:$0xff] }
 0x8c9   : > { %1608 = vmatpush3.bf16.xpose.msra.mxu0 %v992_v48  ;;  %1609 = vmatprep.mubr.msk.bf16.mxu0 %vm1805_vm1, %v1804_v5 }
 0x8ca   : > { %1619 = vmatprep.subr.bf16.mxu0 %v1804_v5 }
 0x8d0   : > { %1610 = vmatmul.mubr.msk.bf16.vlgmr.msra.gmra.mxu0 %vm510_vm2, %v985_v49 }
 0x8d1   : > { %1621 = vmatprep.mubr.msk.bf16.mxu0 %vm1805_vm1, %v1804_v5 }
 0x988   : > { %v929_v51 = vpop.f32.mrf.mxu0 }
 0x989   : > { %v935_v52 = vpack.c.bf16 %v929_v51, %v929_v51  ;;  %v1711_v51 = vld [vmem:[%s2191_s10 + $0x30] sm:$0xff]  }
 0x98a   : > { %v1599_v53 = vpop.f32.mrf.mxu0 }
 0x98b   : > { %1604 = vmatmul.mubr.msk.bf16.vlgmr.msra.gmra.mxu1 %vm510_vm2, %v935_v52  ;;  %v1712_v52 = vld [vmem:[%s2191_s10 + $0x28] sm:$0xff]   ;;  %v1713_v53 = vld [vmem:[%s2191_s10 + $0x20] sm:$0xff]  }
 0x98c   : > { %v932_v54 = vpop.f32.mrf.mxu0  ;;  %1615 = vmatprep.mubr.msk.bf16.mxu1 %vm1805_vm1, %v1804_v5 }
 0x98d   : > { %v1714_v54 = vld [vmem:[%s2191_s10 + $0x18] sm:$0xff]  }
 0x98e   : > { %v1600_v55 = vpop.f32.mrf.mxu0 }
 0x98f   : > { %v1715_v55 = vld [vmem:[%s2191_s10 + $0x10] sm:$0xff]  }
 0x990   : > { %v1028_v56 = vpop.f32.mrf.mxu0 }
 0x991   : > { %v1034_v57 = vsel %vm510_vm2, %v1028_v56, -inf }
 0x992   : > { %1035 = vmax.xlane.f32.xlu1 %v1034_v57  ;;  %v1611_v58 = vpop.f32.mrf.mxu0  ;;  %v1717_v57 = vld [vmem:[%s2191_s10] sm:$0xff]  }
 0x993   : > { %v1489_v58 = vld [vmem:[%s2190_s9] ss:$0 sm:$0xff] }
 0x994   : > { %v1031_v59 = vpop.f32.mrf.mxu0 }
 0x996   : > { %v1612_v60 = vpop.f32.mrf.mxu0 }
 0x9a3   : > { %1046 = vrot.lane.b32.xlu1 %v1968_v23, %s1816_s17  ;;  %v1095_v23 = vld [vmem:[%s2187_s6 + $0xc] sm:$0xf]  ;;  %s404_s17 = scalar_lea.vmem [#allocation2], %s1467_s28 }
 0x9a4   : > { %v1100_v9 = vsel %vm574_vm3, %v1095_v23, 0  ;;  %s1404_s18 = sshll.u32 %s404_s17, 4  ;;  %s2141_s18 = int_to_ptr.vmem [resolvable:$true] %s1404_s18 }
 0x9a5   : > { %1620 = vmatpush3.bf16.msra.mxu0 %v1100_v9  ;;  %s1742_s28 = scalar_lea.vmem %s2141_s18, 128  ;;  %p1749_p0 = scmp.lt.s32.totalorder %s2141_s18, %s1747_s15 }
 0x9a6   : > { %1633 = vmatprep.subr.bf16.mxu0 %v1804_v5  ;;  %p1743_p11 = scmp.ne.s32.totalorder %s2141_s18, %s1742_s28  ;;  %p1750_p1 = scmp.lt.s32.totalorder %s1748_s16, %s1742_s28 }
 0x9a8   : > { %p1744_p12 = pnand %p1743_p11, %p1922_p5  ;;  %p1751_p2 = por %p1750_p1, %p1749_p0 }
 0x9aa   : > { %p1745_p13 = pneg %p1744_p12 }
 0x9ac   : > { %p1752_p3 = pnand %p1751_p2, %p1745_p13 }
 0xa1b   : > { %v1036_v61 = vpop.xlane.xlu1 %1035 }
 0xa1c   : > { %v1037_v62 = vsub.f32 %v1028_v56, %v1036_v61  ;;  %v1716_v56 = vld [vmem:[%s2191_s10 + $0x8] sm:$0xff]  }
 0xa1e   : > { %v1038_v63 = vmul.f32 1.442695, %v1037_v62 }
 0xa1f   : > { %v1047_v1 = vpop.permute.xlu1 %1046 }
 0xa20   : > { %1732 = vpow2.f32 %v1038_v63  ;;  %v1052_v2 = vsel %vm574_vm3, %v1047_v1, 0 }
 0xa21   : > { %1614 = vmatpush3.bf16.msra.mxu1 %v1052_v2 }
 0xa22   : > { %1625 = vmatprep.subr.bf16.mxu1 %v1804_v5 }
 0xa2d   : > { %v1733_v3 = vpop.eup %1732 }
 0xa2e   : > { %v1040_v4 = vsel %vm510_vm2, %v1733_v3, 0.0 }
 0xa2f   : > { %1041 = vadd.xlane.f32.xlu0 %v1040_v4 }
 0xa4b   : > { %v977_v7 = vpop.f32.mrf.mxu1 }
 0xa4c   : > { %v983_v8 = vadd.f32 %v977_v7, %v820_v6 }
 0xa4d   : > { %v1605_v10 = vpop.f32.mrf.mxu1 }
 0xa4f   : > { %v980_v11 = vpop.f32.mrf.mxu1 }
 0xa51   : > { %v1606_v12 = vpop.f32.mrf.mxu1 }
 0xab8   : > { %v1042_v13 = vpop.xlane.xlu0 %1041 }
 0xab9   : > { %1734 = vrcp.f32 %v1042_v13 }
 0xac6   : > { %v1735_v14 = vpop.eup %1734 }
 0xac7   : > { %v1044_v15 = vmul.f32 %v1735_v14, %v1733_v3 }
 0xac9   : > { %v1045_v16 = vpack.c.bf16 %v1044_v15, %v1044_v15 }
 0xacb   : > { %1616 = vmatmul.mubr.msk.bf16.vlgmr.msra.gmra.mxu1 %vm510_vm2, %v1045_v16 }
 0xacc   : > { %1629 = vmatprep.mubr.msk.bf16.mxu1 %vm1805_vm1, %v1804_v5  ;;  %1626 = vmatpush3.bf16.msra.mxu1 %v1708_v35 }
 0xacd   : > { %1627 = vmatprep.subr.bf16.mxu1 %v1804_v5 }
 0xb8b   : > { %v1088_v17 = vpop.f32.mrf.mxu1 }
 0xb8c   : > { %v1094_v18 = vpack.c.bf16 %v1088_v17, %v1088_v17 }
 0xb8d   : > { %v1617_v19 = vpop.f32.mrf.mxu1 }
 0xb8e   : > { %1622 = vmatmul.mubr.msk.bf16.vlgmr.msra.gmra.mxu0 %vm510_vm2, %v1094_v18 }
 0xb8f   : > { %v1091_v20 = vpop.f32.mrf.mxu1  ;;  %1649 = vmatprep.mubr.msk.bf16.mxu0 %vm1805_vm1, %v1804_v5  ;;  %1634 = vmatpush3.bf16.msra.mxu0 %v1710_v50 }
 0xb90   : > { %1635 = vmatprep.subr.bf16.mxu0 %v1804_v5  ;;  %v1817_v20 = vmov -1.0  }
 0xb91   : > { %v1618_v21 = vpop.f32.mrf.mxu1 }
 0xb93   : > { %1636 = vmatpush3.bf16.msra.mxu0 %v1711_v51 }
 0xb94   : > { %1637 = vmatprep.subr.bf16.mxu0 %v1804_v5 }
 0xb97   : > { %1638 = vmatpush3.bf16.msra.mxu0 %v1712_v52 }
 0xb98   : > { %1639 = vmatprep.subr.bf16.mxu0 %v1804_v5 }
 0xb9b   : > { %1640 = vmatpush3.bf16.msra.mxu0 %v1713_v53 }
 0xb9c   : > { %1641 = vmatprep.subr.bf16.mxu0 %v1804_v5 }
 0xb9f   : > { %1642 = vmatpush3.bf16.msra.mxu0 %v1714_v54 }
 0xba0   : > { %1643 = vmatprep.subr.bf16.mxu0 %v1804_v5 }
 0xba3   : > { %1644 = vmatpush3.bf16.msra.mxu0 %v1715_v55 }
 0xba4   : > { %1645 = vmatprep.subr.bf16.mxu0 %v1804_v5 }
 0xba7   : > { %1646 = vmatpush3.bf16.msra.mxu0 %v1716_v56 }
 0xba8   : > { %1647 = vmatprep.subr.bf16.mxu0 %v1804_v5 }
 0xbab   : > { %1648 = vmatpush3.bf16.msra.mxu0 %v1717_v57 }
 0xc4e   : > { %v1136_v22 = vpop.f32.mrf.mxu0 }
 0xc4f   : > { %v1142_v24 = vadd.f32 %v1136_v22, %v983_v8 }
 0xc50   : > { %v1623_v26 = vpop.f32.mrf.mxu0 }
 0xc51   : > { %v1143_v27 = vadd.f32 %v1142_v24, %v1937_v0  ;;  %v1709_v0 = vld [vmem:[%s2189_s8] sm:$0xff]  }
 0xc52   : > { %v1139_v28 = vpop.f32.mrf.mxu0  ;;  %1628 = vmatpush3.bf16.msra.mxu1 %v1709_v0 }
 0xc53   : > { %v2074_v29 = vadd.f32 %v1486_v25, %v1143_v27  ;;  %v1493_v28 = vld [vmem:[%s2192_s11] ss:$0 sm:$0xff] }
 0xc54   : > { %v1624_v30 = vpop.f32.mrf.mxu0 }
 0xc55   : > { %v1154_v32 = vsel %vm413_vm0, %v2074_v29, 0.0  ;;  %v1158_v33 = vmul.f32 %v2074_v29, %v2074_v29 }
 0xc56   : > { %1155 = vadd.xlane.f32.xlu1 %v1154_v32 }
 0xc57   : > { %v1159_v34 = vsel %vm413_vm0, %v1158_v33, 0.0 }
 0xc58   : > { %1160 = vadd.xlane.f32.xlu0 %v1159_v34 }
 0xcdf   : > { %v1156_v36 = vpop.xlane.xlu1 %1155 }
 0xce0   : > { %v1157_v37 = vmul.f32 0.03125, %v1156_v36 }
 0xce1   : > { %v1161_v38 = vpop.xlane.xlu0 %1160 }
 0xce2   : > { %v1163_v39 = vmul.f32 %v1157_v37, %v1157_v37  ;;  %v1162_v40 = vmul.f32 0.03125, %v1161_v38  ;;  %v1167_v45 = vsub.f32 %v2074_v29, %v1157_v37 }
 0xce4   : > { %v1164_v41 = vsub.f32 %v1162_v40, %v1163_v39 }
 0xce6   : > { %v1165_v42 = vadd.f32 1e-05, %v1164_v41 }
 0xce8   : > { %1736 = vrsqrt.f32 %v1165_v42 }
 0xcf5   : > { %v1737_v44 = vpop.eup %1736 }
 0xcf6   : > { %v1174_v46 = vmul.f32 %v1737_v44, %v1487_v43 }
 0xcf8   : > { %v1175_v48 = vmul.f32 %v1174_v46, %v1167_v45 }
 0xcfa   : > { %v1182_v49 = vadd.f32 %v1488_v47, %v1175_v48 }
 0xcfc   : > { %v1183_v31 = vpack.c.bf16 %v1182_v49, %v1182_v49 }
 0xcfe   : > { %1630 = vmatmul.mubr.msk.bf16.vlgmr.msra.gmra.mxu1 %vm413_vm0, %v1183_v31 }
 0xdbe   : > { %v1244_v59 = vpop.f32.mrf.mxu1 }
 0xdbf   : > { %v1245_v60 = vadd.f32 %v1489_v58, %v1244_v59 }
 0xdc0   : > { %v1631_v61 = vpop.f32.mrf.mxu1 }
 0xdc1   : > { %v1251_v62 = vmul.f32 0.70710677, %v1245_v60  ;;  %v1250_v24 = vmul.f32 0.5, %v1245_v60 }
 0xdc2   : > { %v1247_v63 = vpop.f32.mrf.mxu1 }
 0xdc3   : > { %v1254_v1 = vand.u32 2147483647, %v1251_v62  ;;  %vm1252_vm4 = vcmp.ge.f32.partialorder %v1251_v62, 0.0 }
 0xdc4   : > { %v1632_v2 = vpop.f32.mrf.mxu1  ;;  %v1253_v21 = vsel %vm1252_vm4, 1.0, %v1817_v20 }
 0xdc5   : > { %v1255_v3 = vmul.f32 0.3275911, %v1254_v1  ;;  %v1267_v5 = vsub.f32 0.0, %v1254_v1 }
 0xdc7   : > { %v1256_v4 = vadd.f32 1.0, %v1255_v3  ;;  %v1268_v6 = vmul.f32 %v1267_v5, %v1254_v1 }
 0xdc9   : > { %1738 = vrcp.f32 %v1256_v4  ;;  %v1269_v8 = vmul.f32 1.442695, %v1268_v6 }
 0xdcb   : > { %1740 = vpow2.f32 %v1269_v8 }
 0xdd6   : > { %v1739_v7 = vpop.eup %1738 }
 0xdd7   : > { %v1258_v23 = vmul.f32 1.0614054, %v1739_v7 }
 0xdd8   : > { %v1741_v17 = vpop.eup %1740 }
 0xdd9   : > { %v1259_v9 = vadd.f32 -1.4531521, %v1258_v23 }
 0xddb   : > { %v1260_v10 = vmul.f32 %v1739_v7, %v1259_v9 }
 0xddd   : > { %v1261_v11 = vadd.f32 1.4214138, %v1260_v10 }
 0xddf   : > { %v1262_v12 = vmul.f32 %v1739_v7, %v1261_v11 }
 0xde1   : > { %v1263_v13 = vadd.f32 -0.28449672, %v1262_v12 }
 0xde3   : > { %v1264_v14 = vmul.f32 %v1739_v7, %v1263_v13 }
 0xde5   : > { %v1265_v15 = vadd.f32 0.2548296, %v1264_v14 }
 0xde7   : > { %v1266_v16 = vmul.f32 %v1739_v7, %v1265_v15 }
 0xde9   : > { %v1271_v18 = vmul.f32 %v1741_v17, %v1266_v16 }
 0xdeb   : > { %v1272_v19 = vsub.f32 1.0, %v1271_v18 }
 0xded   : > { %v1273_v22 = vmul.f32 %v1272_v19, %v1253_v21 }
 0xdef   : > { %v1274_v25 = vadd.f32 1.0, %v1273_v22 }
 0xdf1   : > { %v1275_v26 = vmul.f32 %v1274_v25, %v1250_v24 }
 0xdf3   : > { %v1276_v27 = vpack.c.bf16 %v1275_v26, %v1275_v26 }
 0xdf5   : > { %1650 = vmatmul.mubr.bf16.vlgmr.msra.gmra.mxu0 %v1276_v27 }
 0xeb5   : > { %v1382_v30 = vpop.f32.mrf.mxu0 }
 0xeb6   : > { %v1383_v32 = vadd.f32 %v1493_v28, %v1382_v30 }
 0xeb7   : > { %v1651_v33 = vpop.f32.mrf.mxu0 }
 0xeb8   : > { %v1388_v34 = vadd.f32 %v1383_v32, %v2074_v29 }
 0xeb9   : > { %v1385_v35 = vpop.f32.mrf.mxu0 }
 0xeba   : > { %1389 = vst.msk [vmem:[%s404_s17] sm:$0xff] %vm413_vm0, %v1388_v34 }
 0xebb   : > { %v1652_v0 = vpop.f32.mrf.mxu0 }
 0xebc   : > { %1755 = shalt.err (!%p1752_p3)
}
 0xebd   : > { %s1756_s17 = scalar_lea.hbm %s2139_s0, 128  ;;  %s1760_s20 = scalar_lea.hbm %s2193_s12, 256 }
 0xebe   : > { %p1757_p4 = scmp.ne.s32.totalorder %s2139_s0, %s1756_s17  ;;  %p1761_p9 = scmp.lt.s32.totalorder %s2139_s0, %s2193_s12 }
 0xebf   : > { %p1762_p10 = scmp.lt.s32.totalorder %s1760_s20, %s1756_s17 }
 0xec0   : > { %p1758_p7 = pnand %p1757_p4, %p1922_p5 }
 0xec1   : > { %p1763_p11 = por %p1762_p10, %p1761_p9 }
 0xec2   : > { %p1759_p8 = pneg %p1758_p7 }
 0xec4   : > { %p1764_p12 = pnand %p1763_p11, %p1759_p8 }
 0xec6   : > { %1767 = shalt.err (!%p1764_p12)
}
 0xec7   : > { %1653 = dma.vmem_to_hbm [thread:$0]  (%p1922_p5), %s2141_s18, 128, %s2139_s0, %s1391_s25  }
 0xec8 PF: > { %p1659_p13 = scmp.ge.s32.totalorder %s1802_s24, 2  ;;  %s1416_s28 = sand.u32 1, %s1790_s21  }
 0xec9   : > { %s1417_s1 = scalar_lea.sflag [#allocation3], %s1416_s28 }
 0xeca   : > { %p1656_p0 = pnand %p1659_p13, %p1926_p6 }
 0xecc   : > { %p1657_p1 = pneg %p1656_p0 }
 0xece   : > { %1785 = dma.done.wait (%p1657_p1), %s1417_s1, 128  }
 0xecf   : > { %1787 = vsyncadd (%p1657_p1), %s1417_s1, 4294967168  ;;  %p22_p2 = scmp.ge.s32.totalorder %s1909_s27, 4   ;;  %s2200_s21 = smov %s1794_s22 }
 0xed0   : > { %s2201_s22 = smov %s1798_s23  ;;  %s2202_s23 = smov %s1920_s30 }
 0xed1   : > { %s2203_s24 = smov %s1909_s27  ;;  %24 = sbr.rel (!%p22_p2) target bundleno = 6 (0x6), region = 103 }
 0xed6   :  { %1422 = vsyncpa [#allocation3], 1 }
 0xed7   :  { %1424 = vsyncpa [#allocation3 + $0x1], 1 }

</bundles_post_ra>
